<compile_context>
chip_gen: v7x
topology: tpu7x:2x2x1
jax: 0.10.0
libtpu: 0.0.40
codegen_flags: <defaults>
</compile_context>

<pallas_src>
import jax
import jax.numpy as jnp
from jax import lax
from jax.experimental import pallas as pl
from jax.experimental.pallas import tpu as pltpu

HIDDEN = 64
HIDDEN_PAD = 128   # pad hidden width to one full lane group
OUT_ROWS = 8       # final output padded to 8 sublane rows (row 0 is real)


def _round_up(x, m):
    return ((x + m - 1) // m) * m


def critic_mlp_kernel(x_ref, w1_ref, w2_ref, w3_ref, w4_ref, b123_ref, b4_ref,
                      o_ref):
    """Fused 4-layer MLP on one batch tile, feature-major internally."""
    x = x_ref[...]            # (TILE_B, S)  batch-major input tile
    b = b123_ref[...]         # (128, 3)     hidden biases as columns

    # Layer 1: (128, S) contracted with (TILE_B, S) over S -> (128, TILE_B).
    # This bridges batch-major input to feature-major without any transpose.
    h = lax.dot_general(w1_ref[...], x,
                        dimension_numbers=(((1,), (1,)), ((), ())),
                        preferred_element_type=jnp.float32)
    h = jnp.maximum(h + b[:, 0:1], 0.0)

    # Layers 2-3: (128,128) @ (128, TILE_B)
    h = jnp.dot(w2_ref[...], h, preferred_element_type=jnp.float32)
    h = jnp.maximum(h + b[:, 1:2], 0.0)

    h = jnp.dot(w3_ref[...], h, preferred_element_type=jnp.float32)
    h = jnp.maximum(h + b[:, 2:3], 0.0)

    # Layer 4: (8,128) @ (128, TILE_B) -> lane-dense (8, TILE_B) block.
    # Only row 0 of w4 is non-zero; rows 1-7 carry just the bias and are
    # discarded by the wrapper.  Full unmasked vector stores.
    out = jnp.dot(w4_ref[...], h, preferred_element_type=jnp.float32)
    o_ref[...] = (out + b4_ref[0, 0]).astype(o_ref.dtype)


def _choose_tile_b(batch, tile_b):
    # Batch maps to lanes -> tile must be a multiple of 128.
    tb = max(128, _round_up(min(tile_b, batch), 128))
    # Prefer >=2 grid steps when the batch allows it (v7x: 2 TensorCores).
    if batch > 128 and _round_up(batch, tb) // tb < 2:
        tb = max(128, _round_up(pl.cdiv(batch, 2), 128))
    return tb


def critic_forward(states, kernel_params, *, tile_b=2048):
    """states: (B, state_dim) f32 -> (B, 1) f32."""
    w1t, w2t, w3t, w4t, b123, b4s = kernel_params
    B, state_dim = states.shape

    tb = _choose_tile_b(B, tile_b)
    b_pad = _round_up(B, tb)
    if b_pad != B:
        states = jnp.pad(states, ((0, b_pad - B), (0, 0)))
    grid = (b_pad // tb,)

    out = pl.pallas_call(
        critic_mlp_kernel,
        out_shape=jax.ShapeDtypeStruct((OUT_ROWS, b_pad), jnp.float32),
        grid=grid,
        in_specs=[
            # Batch tile of states, pipelined over the grid.
            pl.BlockSpec((tb, state_dim), lambda i: (i, 0)),
            # Weights / packed biases: constant index map -> VMEM-resident.
            pl.BlockSpec(w1t.shape, lambda i: (0, 0)),
            pl.BlockSpec(w2t.shape, lambda i: (0, 0)),
            pl.BlockSpec(w3t.shape, lambda i: (0, 0)),
            pl.BlockSpec(w4t.shape, lambda i: (0, 0)),
            pl.BlockSpec(b123.shape, lambda i: (0, 0)),
            # Final scalar bias lives in SMEM.
            pl.BlockSpec(memory_space=pltpu.MemorySpace.SMEM),
        ],
        # Lane-dense output slab: (8, b_pad), one (8, tb) block per step.
        out_specs=pl.BlockSpec((OUT_ROWS, tb), lambda i: (0, i)),
        compiler_params=pltpu.CompilerParams(
            dimension_semantics=("parallel",),
        ),
    )(states, w1t, w2t, w3t, w4t, b123, b4s)

    return out[0, :B].reshape(B, 1)


def init_params(key, state_dim):
    """Torch nn.Linear default init (uniform +/- 1/sqrt(fan_in)).

    Weights stored (in, out); biases stored (out,). Unpadded reference params."""
    dims = [(state_dim, HIDDEN), (HIDDEN, HIDDEN), (HIDDEN, HIDDEN), (HIDDEN, 1)]
    params = []
    for i, (fan_in, fan_out) in enumerate(dims):
        kw, kb = jax.random.split(jax.random.fold_in(key, i))
        bound = 1.0 / (fan_in ** 0.5)
        w = jax.random.uniform(kw, (fan_in, fan_out), jnp.float32, -bound, bound)
        b = jax.random.uniform(kb, (fan_out,), jnp.float32, -bound, bound)
        params.append((w, b))
    return params


def pack_params(params):
    """Pad hidden width 64 -> 128 and pack into feature-major kernel layout."""
    (w1, b1), (w2, b2), (w3, b3), (w4, b4) = params
    p = HIDDEN_PAD - HIDDEN
    w1t = jnp.pad(w1.T, ((0, p), (0, 0)))                 # (128, state_dim)
    w2t = jnp.pad(w2.T, ((0, p), (0, p)))                 # (128, 128)
    w3t = jnp.pad(w3.T, ((0, p), (0, p)))                 # (128, 128)
    w4t = jnp.pad(w4.T, ((0, OUT_ROWS - 1), (0, p)))      # (8, 128), row 0 real
    b123 = jnp.stack([jnp.pad(b1, (0, p)),
                      jnp.pad(b2, (0, p)),
                      jnp.pad(b3, (0, p))], axis=1)       # (128, 3) bias columns
    b4s = b4.reshape(1, 1)                                # scalar bias for SMEM
    return (w1t, w2t, w3t, w4t, b123, b4s)


def reference_forward(states, params):
    (w1, b1), (w2, b2), (w3, b3), (w4, b4) = params
    h = jnp.maximum(states @ w1 + b1, 0.0)
    h = jnp.maximum(h @ w2 + b2, 0.0)
    h = jnp.maximum(h @ w3 + b3, 0.0)
    return h @ w4 + b4


if __name__ == "__main__":
    key = jax.random.PRNGKey(0)
    B, state_dim = 8, 32

    k_x, k_p = jax.random.split(key)
    states = jax.random.normal(k_x, (B, state_dim), jnp.float32)
    params = init_params(k_p, state_dim)
    kernel_params = pack_params(params)

    out = critic_forward(states, kernel_params)
    out = jax.block_until_ready(out)

    ref = reference_forward(states, params)
    assert out.shape == (B, 1)
    assert jnp.allclose(out, ref, atol=1e-5, rtol=1e-5), float(
        jnp.max(jnp.abs(out - ref)))

    print("KERNEL_OK")
</pallas_src>

<mosaic_0001>
module attributes {stable_mosaic.version = 11 : i64} {
  func.func @critic_mlp_kernel(%arg0: i32, %arg1: memref<128x32xf32, #tpu.memory_space<vmem>>, %arg2: memref<128x32xf32, #tpu.memory_space<vmem>>, %arg3: memref<128x128xf32, #tpu.memory_space<vmem>>, %arg4: memref<128x128xf32, #tpu.memory_space<vmem>>, %arg5: memref<8x128xf32, #tpu.memory_space<vmem>>, %arg6: memref<128x3xf32, #tpu.memory_space<vmem>>, %arg7: memref<1x1xf32, #tpu.memory_space<smem>>, %arg8: memref<8x128xf32, #tpu.memory_space<vmem>>) attributes {dimension_semantics = [#tpu.dimension_semantics<parallel>], iteration_bounds = array<i64: 1>, scalar_prefetch = 0 : i64, scratch_operands = 0 : i64, tpu.core_type = #tpu.core_type<tc>, window_params = [{transform_indices = @transform_0, window_bounds = array<i64: 128, 32>}, {pipeline_mode = #tpu.pipeline_mode<synchronous>, transform_indices = @transform_1, window_bounds = array<i64: 128, 32>}, {pipeline_mode = #tpu.pipeline_mode<synchronous>, transform_indices = @transform_2, window_bounds = array<i64: 128, 128>}, {pipeline_mode = #tpu.pipeline_mode<synchronous>, transform_indices = @transform_3, window_bounds = array<i64: 128, 128>}, {pipeline_mode = #tpu.pipeline_mode<synchronous>, transform_indices = @transform_4, window_bounds = array<i64: 8, 128>}, {pipeline_mode = #tpu.pipeline_mode<synchronous>, transform_indices = @transform_5, window_bounds = array<i64: 128, 3>}, {transform_indices = @transform_6, window_bounds = array<i64: 1, 1>}, {transform_indices = @transform_7, window_bounds = array<i64: 8, 128>}]} {
    %c0 = arith.constant 0 : index
    %c0_0 = arith.constant 0 : index
    %0 = vector.load %arg1[%c0, %c0_0] : memref<128x32xf32, #tpu.memory_space<vmem>>, vector<128x32xf32>
    %c0_1 = arith.constant 0 : index
    %c0_2 = arith.constant 0 : index
    %1 = vector.load %arg6[%c0_1, %c0_2] : memref<128x3xf32, #tpu.memory_space<vmem>>, vector<128x3xf32>
    %c0_3 = arith.constant 0 : index
    %c0_4 = arith.constant 0 : index
    %2 = vector.load %arg2[%c0_3, %c0_4] : memref<128x32xf32, #tpu.memory_space<vmem>>, vector<128x32xf32>
    %cst = arith.constant dense<0.000000e+00> : vector<128x128xf32>
    %3 = tpu.matmul %2, %0, %cst {dimension_numbers = #tpu.dot_dimension_numbers<[1], [1], [0], [0], [0, 0, 1, 0], [], []>} : vector<128x32xf32>, vector<128x32xf32>, vector<128x128xf32> -> vector<128x128xf32>
    %4 = vector.extract_strided_slice %1 {offsets = [0, 0], sizes = [128, 1], strides = [1, 1]} : vector<128x3xf32> to vector<128x1xf32>
    %5 = vector.broadcast %4 : vector<128x1xf32> to vector<128x128xf32>
    %6 = arith.addf %3, %5 : vector<128x128xf32>
    %cst_5 = arith.constant 0.000000e+00 : f32
    %7 = vector.broadcast %cst_5 : f32 to vector<128x128xf32>
    %8 = arith.maximumf %6, %7 : vector<128x128xf32>
    %c0_6 = arith.constant 0 : index
    %c0_7 = arith.constant 0 : index
    %9 = vector.load %arg3[%c0_6, %c0_7] : memref<128x128xf32, #tpu.memory_space<vmem>>, vector<128x128xf32>
    %cst_8 = arith.constant dense<0.000000e+00> : vector<128x128xf32>
    %10 = tpu.matmul %9, %8, %cst_8 {dimension_numbers = #tpu.dot_dimension_numbers<[1], [0], [0], [1], [0, 0, 1, 1], [], []>} : vector<128x128xf32>, vector<128x128xf32>, vector<128x128xf32> -> vector<128x128xf32>
    %11 = vector.extract_strided_slice %1 {offsets = [0, 1], sizes = [128, 1], strides = [1, 1]} : vector<128x3xf32> to vector<128x1xf32>
    %12 = vector.broadcast %11 : vector<128x1xf32> to vector<128x128xf32>
    %13 = arith.addf %10, %12 : vector<128x128xf32>
    %cst_9 = arith.constant 0.000000e+00 : f32
    %14 = vector.broadcast %cst_9 : f32 to vector<128x128xf32>
    %15 = arith.maximumf %13, %14 : vector<128x128xf32>
    %c0_10 = arith.constant 0 : index
    %c0_11 = arith.constant 0 : index
    %16 = vector.load %arg4[%c0_10, %c0_11] : memref<128x128xf32, #tpu.memory_space<vmem>>, vector<128x128xf32>
    %cst_12 = arith.constant dense<0.000000e+00> : vector<128x128xf32>
    %17 = tpu.matmul %16, %15, %cst_12 {dimension_numbers = #tpu.dot_dimension_numbers<[1], [0], [0], [1], [0, 0, 1, 1], [], []>} : vector<128x128xf32>, vector<128x128xf32>, vector<128x128xf32> -> vector<128x128xf32>
    %18 = vector.extract_strided_slice %1 {offsets = [0, 2], sizes = [128, 1], strides = [1, 1]} : vector<128x3xf32> to vector<128x1xf32>
    %19 = vector.broadcast %18 : vector<128x1xf32> to vector<128x128xf32>
    %20 = arith.addf %17, %19 : vector<128x128xf32>
    %cst_13 = arith.constant 0.000000e+00 : f32
    %21 = vector.broadcast %cst_13 : f32 to vector<128x128xf32>
    %22 = arith.maximumf %20, %21 : vector<128x128xf32>
    %c0_14 = arith.constant 0 : index
    %c0_15 = arith.constant 0 : index
    %23 = vector.load %arg5[%c0_14, %c0_15] : memref<8x128xf32, #tpu.memory_space<vmem>>, vector<8x128xf32>
    %cst_16 = arith.constant dense<0.000000e+00> : vector<8x128xf32>
    %24 = tpu.matmul %23, %22, %cst_16 {dimension_numbers = #tpu.dot_dimension_numbers<[1], [0], [0], [1], [0, 0, 1, 1], [], []>} : vector<8x128xf32>, vector<128x128xf32>, vector<8x128xf32> -> vector<8x128xf32>
    %c0_17 = arith.constant 0 : index
    %c0_18 = arith.constant 0 : index
    %25 = memref.load %arg7[%c0_17, %c0_18] : memref<1x1xf32, #tpu.memory_space<smem>>
    %26 = vector.broadcast %25 : f32 to vector<8x128xf32>
    %27 = arith.addf %24, %26 : vector<8x128xf32>
    %c0_19 = arith.constant 0 : index
    %c0_20 = arith.constant 0 : index
    %28 = vector.load %arg8[%c0_19, %c0_20] : memref<8x128xf32, #tpu.memory_space<vmem>>, vector<8x128xf32>
    tpu.vector_store %arg8[%c0_19, %c0_20], %27 {strides = array<i32>} : memref<8x128xf32, #tpu.memory_space<vmem>>, vector<8x128xf32>,
    return
  }
  func.func @transform_0(%arg0: i32) -> (i32, i32) {
    %c0_i32 = arith.constant 0 : i32
    %c0_i32_0 = arith.constant 0 : i32
    return %arg0, %c0_i32 : i32, i32
  }
  func.func @transform_1(%arg0: i32) -> (i32, i32) {
    %c0_i32 = arith.constant 0 : i32
    %c0_i32_0 = arith.constant 0 : i32
    %c0_i32_1 = arith.constant 0 : i32
    return %c0_i32, %c0_i32_0 : i32, i32
  }
  func.func @transform_2(%arg0: i32) -> (i32, i32) {
    %c0_i32 = arith.constant 0 : i32
    %c0_i32_0 = arith.constant 0 : i32
    %c0_i32_1 = arith.constant 0 : i32
    return %c0_i32, %c0_i32_0 : i32, i32
  }
  func.func @transform_3(%arg0: i32) -> (i32, i32) {
    %c0_i32 = arith.constant 0 : i32
    %c0_i32_0 = arith.constant 0 : i32
    %c0_i32_1 = arith.constant 0 : i32
    return %c0_i32, %c0_i32_0 : i32, i32
  }
  func.func @transform_4(%arg0: i32) -> (i32, i32) {
    %c0_i32 = arith.constant 0 : i32
    %c0_i32_0 = arith.constant 0 : i32
    %c0_i32_1 = arith.constant 0 : i32
    return %c0_i32, %c0_i32_0 : i32, i32
  }
  func.func @transform_5(%arg0: i32) -> (i32, i32) {
    %c0_i32 = arith.constant 0 : i32
    %c0_i32_0 = arith.constant 0 : i32
    %c0_i32_1 = arith.constant 0 : i32
    return %c0_i32, %c0_i32_0 : i32, i32
  }
  func.func @transform_6(%arg0: i32) -> (i32, i32) {
    %c0_i32 = arith.constant 0 : i32
    %c0_i32_0 = arith.constant 0 : i32
    %c0_i32_1 = arith.constant 0 : i32
    return %c0_i32, %c0_i32_0 : i32, i32
  }
  func.func @transform_7(%arg0: i32) -> (i32, i32) {
    %c0_i32 = arith.constant 0 : i32
    %c0_i32_0 = arith.constant 0 : i32
    return %c0_i32, %arg0 : i32, i32
  }
}

</mosaic_0001>

<bundles_post_ra>
// kernel: tpu_custom_call.1
= control target key start
LH: loop header
LB: loop body
LE: loop exit
PB: predicated region body
PF: predicated region fallthrough
CT: control target
= control target key end

     0   :  { %vm156_vm0 = vcmask 261120   ;;  %v1505_v6 = vmov 0   ;;  %s1952_s0 = inlined_call_operand.vmem [shape: f32[128,32], index: 0, kind: input, shape index: {}]   ;;  %s1953_s1 = inlined_call_operand.vmem [shape: f32[128,32], index: 1, kind: input, shape index: {}]   ;;  %s1954_s2 = inlined_call_operand.vmem [shape: f32[128,128], index: 2, kind: input, shape index: {}]   ;;  %s1955_s3 = inlined_call_operand.vmem [shape: f32[128,128], index: 3, kind: input, shape index: {}]   ;;  %s1956_s4 = inlined_call_operand.vmem [shape: f32[8,128], index: 4, kind: input, shape index: {}]   ;;  %s1957_s5 = inlined_call_operand.vmem [shape: f32[128,3], index: 5, kind: input, shape index: {}]   ;;  %s1958_s6 = inlined_call_operand.<no memory space> [shape: f32[1,1], index: 6, kind: input, shape index: {}]   ;;  %s1959_s7 = inlined_call_operand.hbm [shape: f32[8,128], index: 7, kind: output, shape index: {}]  }
   0x1   :  { %v28_v0 = vld [vmem:[%s1952_s0] sm:$0xff]  ;;  %v29_v1 = vld [vmem:[%s1952_s0 + $0x8] sm:$0xff]  ;;  %v30_v2 = vld [vmem:[%s1952_s0 + $0x10] sm:$0xff]  ;;  %1475 = vset.pattern.permute.xlu0 %v1505_v6  ;;  %1476 = vset.pattern.permute.xlu1 %v1505_v6 }
   0x2   :  { %v1332_v3 = vpack.c.bf16 %v29_v1, %v28_v0  ;;  %vm1563_vm1 = vmpackc.low %vm156_vm0, %vm156_vm0  ;;  %v31_v5 = vld [vmem:[%s1952_s0 + $0x18] sm:$0xff]  ;;  %v60_v8 = vld [vmem:[%s1953_s1] sm:$0xff] }
   0x3   :  { %v1338_v7 = vpack.c.bf16 %v31_v5, %v30_v2  ;;  %v32_v9 = vld [vmem:[%s1952_s0 + $0x20] sm:$0xff]  ;;  %v33_v10 = vld [vmem:[%s1952_s0 + $0x28] sm:$0xff]  ;;  %1161 = vmatprep.mubr.msk.f32.mxu0 %vm156_vm0, %v60_v8  ;;  %v1594_v13 = vld [vmem:[%s1957_s5 + $0x10] sm:$0xff] }
   0x4   :  { %1334 = vmatprep.subr.msk.bf16.mxu0 %vm1563_vm1, %v1332_v3  ;;  %v1344_v11 = vpack.c.bf16 %v33_v10, %v32_v9  ;;  %v1589_v12 = vld [vmem:[%s1957_s5] sm:$0xff]  ;;  %88 = vperm.xlu1 %1476, %v1594_v13   ;;  %v1605_v14 = vld [vmem:[%s1957_s5 + $0x8] sm:$0xff]  ;;  %v34_v15 = vld [vmem:[%s1952_s0 + $0x30] sm:$0xff] }
   0x5   :  { %1337 = vmatpush3.bf16.xpose.msk.msra.mxu0 %vm1563_vm1, %v1332_v3  ;;  %78 = vperm.xlu0 %1475, %v1589_v12   ;;  %v35_v16 = vld [vmem:[%s1952_s0 + $0x38] sm:$0xff] }
   0x6   :  { %1340 = vmatprep.subr.msk.bf16.mxu0 %vm1563_vm1, %v1338_v7  ;;  %v1616_v17 = vld [vmem:[%s1957_s5 + $0x18] sm:$0xff] }
   0x9   :  { %83 = vperm.xlu0 %1475, %v1605_v14  }
   0xd   :  { %1343 = vmatpush3.bf16.xpose.msk.msra.mxu0 %vm1563_vm1, %v1338_v7 }
   0xe   :  { %1346 = vmatprep.subr.msk.bf16.mxu0 %vm1563_vm1, %v1344_v11 }
   0xf   :  { %13 = vsyncpa [#allocation4], 0  ;;  %v1350_v18 = vpack.c.bf16 %v35_v16, %v34_v15  ;;  %93 = vperm.xlu1 %1476, %v1616_v17   ;;  %v1623_v19 = vld [vmem:[%s1957_s5 + $0x20] sm:$0xff]  ;;  %v1628_v20 = vld [vmem:[%s1957_s5 + $0x28] sm:$0xff]  ;;  %v1506_v59 = vmov 1   ;;  %vm1509_vm2 = vmmov 0  }
  0x10   :  { %98 = vperm.xlu0 %1475, %v1623_v19   ;;  %v1639_v21 = vld [vmem:[%s1957_s5 + $0x30] sm:$0xff]  ;;  %v36_v22 = vld [vmem:[%s1952_s0 + $0x40] sm:$0xff]  ;;  %v37_v23 = vld [vmem:[%s1952_s0 + $0x48] sm:$0xff]  ;;  %s1511_s13 = smov [#allocation3]  }
  0x11   :  { %v1650_v24 = vld [vmem:[%s1957_s5 + $0x38] sm:$0xff]  ;;  %v1356_v25 = vpack.c.bf16 %v37_v23, %v36_v22  ;;  %v1657_v26 = vld [vmem:[%s1957_s5 + $0x40] sm:$0xff]  ;;  %v1662_v27 = vld [vmem:[%s1957_s5 + $0x48] sm:$0xff]  ;;  %s976_s14 = sshll.u32 %s1511_s13, 4  ;;  %s977_s14 = int_to_ptr.vmem [resolvable:$true] %s976_s14 }
  0x12   :  { %v1673_v28 = vld [vmem:[%s1957_s5 + $0x50] sm:$0xff]  ;;  %v39_v30 = vld [vmem:[%s1952_s0 + $0x58] sm:$0xff]  ;;  %v1691_v33 = vld [vmem:[%s1957_s5 + $0x60] sm:$0xff]  ;;  %s1481_s15 = scalar_lea.vmem %s977_s14, 128  ;;  %p1486_p1 = scmp.lt.s32.totalorder %s977_s14, %s977_s14 }
  0x13   :  { %103 = vperm.xlu1 %1476, %v1628_v20   ;;  %v38_v29 = vld [vmem:[%s1952_s0 + $0x50] sm:$0xff]  ;;  %v1684_v31 = vld [vmem:[%s1957_s5 + $0x58] sm:$0xff]  ;;  %v1696_v34 = vld [vmem:[%s1957_s5 + $0x68] sm:$0xff]  ;;  %p1482_p0 = scmp.ne.s32.totalorder %s977_s14, %s1481_s15  ;;  %p1487_p2 = scmp.lt.s32.totalorder %s1481_s15, %s1481_s15 }
  0x14   :  { %108 = vperm.xlu0 %1475, %v1639_v21   ;;  %v1362_v32 = vpack.c.bf16 %v39_v30, %v38_v29  ;;  %v1707_v35 = vld [vmem:[%s1957_s5 + $0x70] sm:$0xff]  ;;  %v40_v36 = vld [vmem:[%s1952_s0 + $0x60] sm:$0xff]  ;;  %v41_v37 = vld [vmem:[%s1952_s0 + $0x68] sm:$0xff] }
  0x15   :  { %1349 = vmatpush3.bf16.xpose.msk.msra.mxu0 %vm1563_vm1, %v1344_v11  ;;  %v1718_v38 = vld [vmem:[%s1957_s5 + $0x78] sm:$0xff]  ;;  %v1368_v39 = vpack.c.bf16 %v41_v37, %v40_v36  ;;  %v42_v40 = vld [vmem:[%s1952_s0 + $0x70] sm:$0xff]  ;;  %v61_v43 = vld [vmem:[%s1953_s1 + $0x8] sm:$0xff]  ;;  %p1488_p3 = por %p1487_p2, %p1486_p1 }
  0x16   :  { %1352 = vmatprep.subr.msk.bf16.mxu0 %vm1563_vm1, %v1350_v18  ;;  %v43_v41 = vld [vmem:[%s1952_s0 + $0x78] sm:$0xff]  ;;  %v62_v44 = vld [vmem:[%s1953_s1 + $0x10] sm:$0xff]  ;;  %v64_v46 = vld [vmem:[%s1953_s1 + $0x20] sm:$0xff] }
  0x17   :  { %113 = vperm.xlu1 %1476, %v1650_v24   ;;  %v1374_v42 = vpack.c.bf16 %v43_v41, %v42_v40  ;;  %v63_v45 = vld [vmem:[%s1953_s1 + $0x18] sm:$0xff]  ;;  %v65_v47 = vld [vmem:[%s1953_s1 + $0x28] sm:$0xff]  ;;  %v66_v48 = vld [vmem:[%s1953_s1 + $0x30] sm:$0xff]  ;;  %p1489_p4 = pnand %p1488_p3, %p1482_p0 }
  0x18   :  { %118 = vperm.xlu0 %1475, %v1657_v26   ;;  %v67_v49 = vld [vmem:[%s1953_s1 + $0x38] sm:$0xff]  ;;  %v68_v50 = vld [vmem:[%s1953_s1 + $0x40] sm:$0xff]  ;;  %v69_v51 = vld [vmem:[%s1953_s1 + $0x48] sm:$0xff] }
  0x19   :  { %v70_v52 = vld [vmem:[%s1953_s1 + $0x50] sm:$0xff]  ;;  %v71_v53 = vld [vmem:[%s1953_s1 + $0x58] sm:$0xff]  ;;  %v72_v54 = vld [vmem:[%s1953_s1 + $0x60] sm:$0xff] }
  0x1a   :  { %v73_v55 = vld [vmem:[%s1953_s1 + $0x68] sm:$0xff]  ;;  %v74_v56 = vld [vmem:[%s1953_s1 + $0x70] sm:$0xff]  ;;  %v75_v57 = vld [vmem:[%s1953_s1 + $0x78] sm:$0xff] }
  0x1b   :  { %123 = vperm.xlu1 %1476, %v1662_v27   ;;  %v414_v58 = vld [vmem:[%s1954_s2] sm:$0xff] }
  0x1c   :  { %128 = vperm.xlu0 %1475, %v1673_v28   ;;  %1217 = vmatprep.mubr.f32.mxu1 %v414_v58 }
  0x1d   :  { %1355 = vmatpush3.bf16.xpose.msk.msra.mxu0 %vm1563_vm1, %v1350_v18 }
  0x1e   :  { %1358 = vmatprep.subr.msk.bf16.mxu0 %vm1563_vm1, %v1356_v25 }
  0x1f   :  { %133 = vperm.xlu1 %1476, %v1684_v31  }
  0x20   :  { %138 = vperm.xlu0 %1475, %v1691_v33  }
  0x23   :  { %143 = vperm.xlu1 %1476, %v1696_v34  }
  0x24   :  { %148 = vperm.xlu0 %1475, %v1707_v35  }
  0x25   :  { %1361 = vmatpush3.bf16.xpose.msk.msra.mxu0 %vm1563_vm1, %v1356_v25 }
  0x26   :  { %1364 = vmatprep.subr.msk.bf16.mxu0 %vm1563_vm1, %v1362_v32 }
  0x27   :  { %153 = vperm.xlu1 %1476, %v1718_v38  }
  0x28   :  { %1477 = vset.pattern.permute.xlu0 %v1506_v59 }
  0x29   :  { %431 = vperm.xlu0 %1477, %v1589_v12  }
  0x2b   :  { %1478 = vset.pattern.permute.xlu1 %v1506_v59 }
  0x2c   :  { %435 = vperm.xlu1 %1478, %v1605_v14  }
  0x2d   :  { %1367 = vmatpush3.bf16.xpose.msk.msra.mxu0 %vm1563_vm1, %v1362_v32  ;;  %443 = vperm.xlu0 %1477, %v1616_v17  }
  0x2e   :  { %1370 = vmatprep.subr.msk.bf16.mxu0 %vm1563_vm1, %v1368_v39 }
  0x30   :  { %439 = vperm.xlu1 %1478, %v1594_v13  }
  0x31   :  { %451 = vperm.xlu0 %1477, %v1628_v20  }
  0x34   :  { %447 = vperm.xlu1 %1478, %v1623_v19  }
  0x35   :  { %1373 = vmatpush3.bf16.xpose.msk.msra.mxu0 %vm1563_vm1, %v1368_v39  ;;  %459 = vperm.xlu0 %1477, %v1650_v24  }
  0x36   :  { %1376 = vmatprep.subr.msk.bf16.mxu0 %vm1563_vm1, %v1374_v42 }
  0x38   :  { %455 = vperm.xlu1 %1478, %v1639_v21  }
  0x39   :  { %467 = vperm.xlu0 %1477, %v1662_v27  }
  0x3c   :  { %463 = vperm.xlu1 %1478, %v1657_v26  }
  0x3d   :  { %1379 = vmatpush3.bf16.xpose.msk.msra.mxu0 %vm1563_vm1, %v1374_v42  ;;  %475 = vperm.xlu0 %1477, %v1684_v31  }
  0x40   :  { %471 = vperm.xlu1 %1478, %v1673_v28  }
  0x41   :  { %483 = vperm.xlu0 %1477, %v1696_v34  }
  0x44   :  { %1162 = vmatmul.mubr.msk.f32.vlgmr.msra.gmra.mrb[0].mxu0 %vm156_vm0, %v61_v43  ;;  %479 = vperm.xlu1 %1478, %v1691_v33  }
  0x45   :  { %1164 = vmatprep.mubr.msk.f32.mxu0 %vm156_vm0, %v62_v44  ;;  %491 = vperm.xlu0 %1477, %v1718_v38  }
  0x48   :  { %1165 = vmatmul.mubr.msk.f32.gmra.mrb[2].mxu0 %vm156_vm0, %v63_v45  ;;  %487 = vperm.xlu1 %1478, %v1707_v35  }
  0x49   :  { %1167 = vmatprep.mubr.msk.f32.mxu0 %vm156_vm0, %v64_v46 }
  0x4c   :  { %1168 = vmatmul.mubr.msk.f32.gmra.mrb[4].mxu0 %vm156_vm0, %v65_v47 }
  0x4d   :  { %1170 = vmatprep.mubr.msk.f32.mxu0 %vm156_vm0, %v66_v48 }
  0x50   :  { %1171 = vmatmul.mubr.msk.f32.gmra.mrb[6].mxu0 %vm156_vm0, %v67_v49 }
  0x51   :  { %1173 = vmatprep.mubr.msk.f32.mxu0 %vm156_vm0, %v68_v50 }
  0x54   :  { %1174 = vmatmul.mubr.msk.f32.gmra.mrb[8].mxu0 %vm156_vm0, %v69_v51 }
  0x55   :  { %1176 = vmatprep.mubr.msk.f32.mxu0 %vm156_vm0, %v70_v52 }
  0x58   :  { %1177 = vmatmul.mubr.msk.f32.gmra.mrb[10].mxu0 %vm156_vm0, %v71_v53 }
  0x59   :  { %1179 = vmatprep.mubr.msk.f32.mxu0 %vm156_vm0, %v72_v54 }
  0x5c   :  { %1180 = vmatmul.mubr.msk.f32.gmra.mrb[12].mxu0 %vm156_vm0, %v73_v55 }
  0x5d   :  { %1182 = vmatprep.mubr.msk.f32.mxu0 %vm156_vm0, %v74_v56 }
  0x60   :  { %1183 = vmatmul.mubr.msk.f32.gmra.mrb[14].mxu0 %vm156_vm0, %v75_v57 }
  0x83   :  { %v89_v60 = vpop.permute.xlu1 %88 }
  0x84   :  { %v79_v61 = vpop.permute.xlu0 %78 }
  0x88   :  { %v84_v63 = vpop.permute.xlu0 %83 }
  0x8e   :  { %v94_v62 = vpop.permute.xlu1 %93 }
  0x8f   :  { %v99_v1 = vpop.permute.xlu0 %98 }
  0x92   :  { %v104_v0 = vpop.permute.xlu1 %103 }
  0x93   :  { %v109_v10 = vpop.permute.xlu0 %108 }
  0x96   :  { %v114_v7 = vpop.permute.xlu1 %113 }
  0x97   :  { %v119_v39 = vpop.permute.xlu0 %118 }
  0x9a   :  { %v124_v32 = vpop.permute.xlu1 %123 }
  0x9b   :  { %v129_v51 = vpop.permute.xlu0 %128 }
  0x9e   :  { %v134_v48 = vpop.permute.xlu1 %133 }
 0x117   :  { %v1163_v2 = vpop.f32.mrb[0].mxu0 }
 0x118   :  { %v325_v3 = vadd.f32 %v1163_v2, %v84_v63  ;;  %v319_v4 = vpop.f32.mrb[1].mxu0 }
 0x119   :  { %v320_v5 = vadd.f32 %v319_v4, %v79_v61  ;;  %v144_v61 = vpop.permute.xlu1 %143 }
 0x11a   :  { %v399_v6 = vmax.f32 %v325_v3, 0.0 }
 0x11b   :  { %v398_v8 = vmax.f32 %v320_v5, 0.0  ;;  %v1166_v9 = vpop.f32.mrb[2].mxu0 }
 0x11c   :  { %v335_v11 = vadd.f32 %v1166_v9, %v94_v62  ;;  %v329_v15 = vpop.f32.mrb[3].mxu0 }
 0x11d   :  { %v330_v16 = vadd.f32 %v329_v15, %v89_v60  ;;  %v1380_v18 = vpack.c.bf16 %v399_v6, %v398_v8  ;;  %v154_v9 = vpop.permute.xlu1 %153 }
 0x11e   :  { %v401_v22 = vmax.f32 %v335_v11, 0.0 }
 0x11f   :  { %v400_v23 = vmax.f32 %v330_v16, 0.0  ;;  %v1169_v25 = vpop.f32.mrb[4].mxu0  ;;  %1381 = vmatprep.subr.bf16.mxu1 %v1380_v18 }
 0x120   :  { %v345_v29 = vadd.f32 %v1169_v25, %v104_v0  ;;  %v339_v30 = vpop.f32.mrb[5].mxu0  ;;  %1383 = vmatpush3.bf16.msra.mxu1 %v1380_v18  ;;  %v139_v0 = vpop.permute.xlu0 %138 }
 0x121   :  { %v1384_v36 = vpack.c.bf16 %v401_v22, %v400_v23  ;;  %v340_v37 = vadd.f32 %v339_v30, %v99_v1 }
 0x122   :  { %v403_v40 = vmax.f32 %v345_v29, 0.0 }
 0x123   :  { %v402_v41 = vmax.f32 %v340_v37, 0.0  ;;  %v1172_v42 = vpop.f32.mrb[6].mxu0  ;;  %1385 = vmatprep.subr.bf16.mxu1 %v1384_v36  ;;  %v417_v37 = vld [vmem:[%s1954_s2 + $0x18] sm:$0xff] }
 0x124   :  { %v355_v43 = vadd.f32 %v1172_v42, %v114_v7  ;;  %v349_v44 = vpop.f32.mrb[7].mxu0  ;;  %1387 = vmatpush3.bf16.msra.mxu1 %v1384_v36  ;;  %v149_v15 = vpop.permute.xlu0 %148  ;;  %v416_v36 = vld [vmem:[%s1954_s2 + $0x10] sm:$0xff]  ;;  %v421_v42 = vld [vmem:[%s1954_s2 + $0x38] sm:$0xff] }
 0x125   :  { %v1388_v45 = vpack.c.bf16 %v403_v40, %v402_v41  ;;  %v350_v46 = vadd.f32 %v349_v44, %v109_v10  ;;  %v419_v40 = vld [vmem:[%s1954_s2 + $0x28] sm:$0xff]  ;;  %v420_v41 = vld [vmem:[%s1954_s2 + $0x30] sm:$0xff] }
 0x126   :  { %v405_v47 = vmax.f32 %v355_v43, 0.0  ;;  %v422_v43 = vld [vmem:[%s1954_s2 + $0x40] sm:$0xff]  ;;  %v423_v44 = vld [vmem:[%s1954_s2 + $0x48] sm:$0xff] }
 0x127   :  { %v404_v49 = vmax.f32 %v350_v46, 0.0  ;;  %v1175_v50 = vpop.f32.mrb[8].mxu0  ;;  %1389 = vmatprep.subr.bf16.mxu1 %v1388_v45  ;;  %v425_v46 = vld [vmem:[%s1954_s2 + $0x58] sm:$0xff] }
 0x128   :  { %v365_v52 = vadd.f32 %v1175_v50, %v124_v32  ;;  %v359_v53 = vpop.f32.mrb[9].mxu0  ;;  %1391 = vmatpush3.bf16.msra.mxu1 %v1388_v45  ;;  %v415_v32 = vld [vmem:[%s1954_s2 + $0x8] sm:$0xff]  ;;  %v424_v45 = vld [vmem:[%s1954_s2 + $0x50] sm:$0xff]  ;;  %v429_v50 = vld [vmem:[%s1954_s2 + $0x78] sm:$0xff] }
 0x129   :  { %v1392_v54 = vpack.c.bf16 %v405_v47, %v404_v49  ;;  %v360_v55 = vadd.f32 %v359_v53, %v119_v39  ;;  %v418_v39 = vld [vmem:[%s1954_s2 + $0x20] sm:$0xff]  ;;  %v428_v49 = vld [vmem:[%s1954_s2 + $0x70] sm:$0xff] }
 0x12a   :  { %v407_v56 = vmax.f32 %v365_v52, 0.0  ;;  %v426_v47 = vld [vmem:[%s1954_s2 + $0x60] sm:$0xff]  ;;  %v1507_v52 = vmov 2  }
 0x12b   :  { %v406_v57 = vmax.f32 %v360_v55, 0.0  ;;  %v1178_v58 = vpop.f32.mrb[10].mxu0  ;;  %1393 = vmatprep.subr.bf16.mxu1 %v1392_v54  ;;  %1479 = vset.pattern.permute.xlu1 %v1507_v52 }
 0x12c   :  { %v375_v59 = vadd.f32 %v1178_v58, %v134_v48  ;;  %v369_v60 = vpop.f32.mrb[11].mxu0  ;;  %1395 = vmatpush3.bf16.msra.mxu1 %v1392_v54  ;;  %v427_v48 = vld [vmem:[%s1954_s2 + $0x68] sm:$0xff]  ;;  %1480 = vset.pattern.permute.xlu0 %v1507_v52 }
 0x12d   :  { %v1396_v62 = vpack.c.bf16 %v407_v56, %v406_v57  ;;  %v370_v63 = vadd.f32 %v369_v60, %v129_v51  ;;  %v655_v51 = vld [vmem:[%s1955_s3] sm:$0xff]  ;;  %672 = vperm.xlu1 %1479, %v1589_v12   ;;  %676 = vperm.xlu0 %1480, %v1605_v14   ;;  %v432_v12 = vpop.permute.xlu0 %431 }
 0x12e   :  { %v409_v1 = vmax.f32 %v375_v59, 0.0 }
 0x12f   :  { %v408_v2 = vmax.f32 %v370_v63, 0.0  ;;  %v1181_v3 = vpop.f32.mrb[12].mxu0  ;;  %1397 = vmatprep.subr.bf16.mxu1 %v1396_v62 }
 0x130   :  { %v385_v4 = vadd.f32 %v1181_v3, %v144_v61  ;;  %v379_v5 = vpop.f32.mrb[13].mxu0  ;;  %1399 = vmatpush3.bf16.msra.mxu1 %v1396_v62 }
 0x131   :  { %v1400_v6 = vpack.c.bf16 %v409_v1, %v408_v2  ;;  %v380_v7 = vadd.f32 %v379_v5, %v139_v0  ;;  %680 = vperm.xlu1 %1479, %v1594_v13   ;;  %688 = vperm.xlu0 %1480, %v1623_v19   ;;  %v436_v13 = vpop.permute.xlu1 %435  ;;  %v444_v14 = vpop.permute.xlu0 %443 }
 0x132   :  { %v411_v8 = vmax.f32 %v385_v4, 0.0 }
 0x133   :  { %v410_v10 = vmax.f32 %v380_v7, 0.0  ;;  %v1184_v11 = vpop.f32.mrb[14].mxu0  ;;  %1401 = vmatprep.subr.bf16.mxu1 %v1400_v6 }
 0x134   :  { %v395_v16 = vadd.f32 %v1184_v11, %v154_v9  ;;  %v389_v18 = vpop.f32.mrb[15].mxu0  ;;  %1403 = vmatpush3.bf16.msra.mxu1 %v1400_v6 }
 0x135   :  { %v1404_v22 = vpack.c.bf16 %v411_v8, %v410_v10  ;;  %v390_v23 = vadd.f32 %v389_v18, %v149_v15  ;;  %684 = vperm.xlu1 %1479, %v1616_v17   ;;  %696 = vperm.xlu0 %1480, %v1639_v21   ;;  %v440_v17 = vpop.permute.xlu1 %439  ;;  %v452_v19 = vpop.permute.xlu0 %451 }
 0x136   :  { %v413_v25 = vmax.f32 %v395_v16, 0.0 }
 0x137   :  { %v412_v29 = vmax.f32 %v390_v23, 0.0  ;;  %1405 = vmatprep.subr.bf16.mxu1 %v1404_v22 }
 0x138   :  { %1407 = vmatpush3.bf16.msra.mxu1 %v1404_v22 }
 0x139   :  { %v1408_v30 = vpack.c.bf16 %v413_v25, %v412_v29  ;;  %692 = vperm.xlu1 %1479, %v1628_v20   ;;  %704 = vperm.xlu0 %1480, %v1657_v26   ;;  %v448_v20 = vpop.permute.xlu1 %447 }
 0x13b   :  { %1409 = vmatprep.subr.bf16.mxu1 %v1408_v30 }
 0x13c   :  { %1411 = vmatpush3.bf16.msra.mxu1 %v1408_v30 }
 0x13d   :  { %700 = vperm.xlu1 %1479, %v1650_v24   ;;  %712 = vperm.xlu0 %1480, %v1673_v28   ;;  %v456_v54 = vpop.permute.xlu1 %455 }
 0x13f   :  { %1218 = vmatmul.mubr.f32.vlgmr.msra.gmra.mrb[0].mxu1 %v415_v32 }
 0x140   :  { %1220 = vmatprep.mubr.f32.mxu1 %v416_v36 }
 0x141   :  { %708 = vperm.xlu1 %1479, %v1662_v27   ;;  %720 = vperm.xlu0 %1480, %v1691_v33   ;;  %v460_v33 = vpop.permute.xlu0 %459  ;;  %v464_v0 = vpop.permute.xlu1 %463 }
 0x143   :  { %1221 = vmatmul.mubr.f32.gmra.mrb[2].mxu1 %v417_v37 }
 0x144   :  { %1223 = vmatprep.mubr.f32.mxu1 %v418_v39 }
 0x145   :  { %716 = vperm.xlu1 %1479, %v1684_v31   ;;  %728 = vperm.xlu0 %1480, %v1707_v35   ;;  %v468_v61 = vpop.permute.xlu0 %467  ;;  %v472_v15 = vpop.permute.xlu1 %471 }
 0x147   :  { %1224 = vmatmul.mubr.f32.gmra.mrb[4].mxu1 %v419_v40 }
 0x148   :  { %1226 = vmatprep.mubr.f32.mxu1 %v420_v41 }
 0x149   :  { %724 = vperm.xlu1 %1479, %v1696_v34   ;;  %v476_v9 = vpop.permute.xlu0 %475  ;;  %v480_v41 = vpop.permute.xlu1 %479 }
 0x14b   :  { %1227 = vmatmul.mubr.f32.gmra.mrb[6].mxu1 %v421_v42 }
 0x14c   :  { %1229 = vmatprep.mubr.f32.mxu1 %v422_v43 }
 0x14d   :  { %732 = vperm.xlu1 %1479, %v1718_v38   ;;  %v484_v37 = vpop.permute.xlu0 %483 }
 0x14f   :  { %1230 = vmatmul.mubr.f32.gmra.mrb[8].mxu1 %v423_v44 }
 0x150   :  { %1232 = vmatprep.mubr.f32.mxu1 %v424_v45 }
 0x153   :  { %1233 = vmatmul.mubr.f32.gmra.mrb[10].mxu1 %v425_v46 }
 0x154   :  { %1235 = vmatprep.mubr.f32.mxu1 %v426_v47 }
 0x157   :  { %1236 = vmatmul.mubr.f32.gmra.mrb[12].mxu1 %v427_v48 }
 0x158   :  { %1238 = vmatprep.mubr.f32.mxu1 %v428_v49 }
 0x15b   :  { %1239 = vmatmul.mubr.f32.gmra.mrb[14].mxu1 %v429_v50  ;;  %v492_v50 = vpop.permute.xlu0 %491 }
 0x15c   :  { %1273 = vmatprep.mubr.f32.mxu1 %v655_v51 }
 0x212   :  { %v1219_v21 = vpop.f32.mrb[0].mxu1 }
 0x213   :  { %v566_v24 = vadd.f32 %v1219_v21, %v436_v13  ;;  %v560_v26 = vpop.f32.mrb[1].mxu1 }
 0x214   :  { %v561_v27 = vadd.f32 %v560_v26, %v432_v12  ;;  %v488_v12 = vpop.permute.xlu1 %487  ;;  %v656_v26 = vld [vmem:[%s1955_s3 + $0x8] sm:$0xff] }
 0x215   :  { %v640_v28 = vmax.f32 %v566_v24, 0.0 }
 0x216   :  { %v639_v53 = vmax.f32 %v561_v27, 0.0  ;;  %v1222_v31 = vpop.f32.mrb[2].mxu1  ;;  %v657_v27 = vld [vmem:[%s1955_s3 + $0x10] sm:$0xff] }
 0x217   :  { %v576_v35 = vadd.f32 %v1222_v31, %v444_v14  ;;  %v570_v55 = vpop.f32.mrb[3].mxu1  ;;  %v661_v31 = vld [vmem:[%s1955_s3 + $0x30] sm:$0xff] }
 0x218   :  { %v1412_v34 = vpack.c.bf16 %v640_v28, %v639_v53  ;;  %v571_v56 = vadd.f32 %v570_v55, %v440_v17  ;;  %v658_v28 = vld [vmem:[%s1955_s3 + $0x18] sm:$0xff]  ;;  %v660_v53 = vld [vmem:[%s1955_s3 + $0x28] sm:$0xff] }
 0x219   :  { %v642_v38 = vmax.f32 %v576_v35, 0.0  ;;  %v663_v35 = vld [vmem:[%s1955_s3 + $0x40] sm:$0xff]  ;;  %v664_v55 = vld [vmem:[%s1955_s3 + $0x48] sm:$0xff] }
 0x21a   :  { %v641_v57 = vmax.f32 %v571_v56, 0.0  ;;  %v1225_v58 = vpop.f32.mrb[4].mxu1  ;;  %1413 = vmatprep.subr.bf16.mxu1 %v1412_v34  ;;  %v666_v56 = vld [vmem:[%s1955_s3 + $0x58] sm:$0xff] }
 0x21b   :  { %v586_v59 = vadd.f32 %v1225_v58, %v452_v19  ;;  %v580_v60 = vpop.f32.mrb[5].mxu1  ;;  %1415 = vmatpush3.bf16.msra.mxu1 %v1412_v34  ;;  %v665_v34 = vld [vmem:[%s1955_s3 + $0x50] sm:$0xff] }
 0x21c   :  { %v1416_v62 = vpack.c.bf16 %v642_v38, %v641_v57  ;;  %v581_v63 = vadd.f32 %v580_v60, %v448_v20  ;;  %v667_v38 = vld [vmem:[%s1955_s3 + $0x60] sm:$0xff]  ;;  %v668_v57 = vld [vmem:[%s1955_s3 + $0x68] sm:$0xff]  ;;  %v669_v58 = vld [vmem:[%s1955_s3 + $0x70] sm:$0xff]  ;;  %v1508_v60 = vmov 0.0|0.0  }
 0x21d   :  { %v644_v1 = vmax.f32 %v586_v59, 0.0  ;;  %v670_v59 = vld [vmem:[%s1955_s3 + $0x78] sm:$0xff]  ;;  %1444 = vmatprep.subr.bf16.mxu0 %v1508_v60 }
 0x21e   :  { %v643_v2 = vmax.f32 %v581_v63, 0.0  ;;  %v1228_v3 = vpop.f32.mrb[6].mxu1  ;;  %1417 = vmatprep.subr.bf16.mxu1 %v1416_v62 }
 0x21f   :  { %v596_v4 = vadd.f32 %v1228_v3, %v460_v33  ;;  %v590_v5 = vpop.f32.mrb[7].mxu1  ;;  %1419 = vmatpush3.bf16.msra.mxu1 %v1416_v62  ;;  %v659_v33 = vld [vmem:[%s1955_s3 + $0x20] sm:$0xff]  ;;  %v673_v62 = vpop.permute.xlu1 %672 }
 0x220   :  { %v1420_v6 = vpack.c.bf16 %v644_v1, %v643_v2  ;;  %v591_v7 = vadd.f32 %v590_v5, %v456_v54  ;;  %v662_v54 = vld [vmem:[%s1955_s3 + $0x38] sm:$0xff]  ;;  %v677_v1 = vpop.permute.xlu0 %676 }
 0x221   :  { %v646_v8 = vmax.f32 %v596_v4, 0.0 }
 0x222   :  { %v645_v10 = vmax.f32 %v591_v7, 0.0  ;;  %v1231_v11 = vpop.f32.mrb[8].mxu1  ;;  %1421 = vmatprep.subr.bf16.mxu1 %v1420_v6 }
 0x223   :  { %v606_v16 = vadd.f32 %v1231_v11, %v468_v61  ;;  %v600_v18 = vpop.f32.mrb[9].mxu1  ;;  %1423 = vmatpush3.bf16.msra.mxu1 %v1420_v6  ;;  %v1510_v61 = vmov 0.0   ;;  %v681_v63 = vpop.permute.xlu1 %680 }
 0x224   :  { %v1424_v22 = vpack.c.bf16 %v646_v8, %v645_v10  ;;  %v601_v23 = vadd.f32 %v600_v18, %v464_v0  ;;  %1329 = vmatprep.mubr.msk.f32.mxu0 %vm1509_vm2, %v1510_v61  ;;  %v689_v3 = vpop.permute.xlu0 %688 }
 0x225   :  { %v648_v25 = vmax.f32 %v606_v16, 0.0 }
 0x226   :  { %v647_v29 = vmax.f32 %v601_v23, 0.0  ;;  %v1234_v30 = vpop.f32.mrb[10].mxu1  ;;  %1425 = vmatprep.subr.bf16.mxu1 %v1424_v22 }
 0x227   :  { %v616_v32 = vadd.f32 %v1234_v30, %v476_v9  ;;  %v610_v36 = vpop.f32.mrb[11].mxu1  ;;  %1427 = vmatpush3.bf16.msra.mxu1 %v1424_v22  ;;  %v685_v0 = vpop.permute.xlu1 %684 }
 0x228   :  { %v1428_v39 = vpack.c.bf16 %v648_v25, %v647_v29  ;;  %v611_v40 = vadd.f32 %v610_v36, %v472_v15  ;;  %v697_v15 = vpop.permute.xlu0 %696 }
 0x229   :  { %v650_v42 = vmax.f32 %v616_v32, 0.0 }
 0x22a   :  { %v649_v43 = vmax.f32 %v611_v40, 0.0  ;;  %v1237_v44 = vpop.f32.mrb[12].mxu1  ;;  %1429 = vmatprep.subr.bf16.mxu1 %v1428_v39 }
 0x22b   :  { %v626_v45 = vadd.f32 %v1237_v44, %v484_v37  ;;  %v620_v46 = vpop.f32.mrb[13].mxu1  ;;  %1431 = vmatpush3.bf16.msra.mxu1 %v1428_v39  ;;  %v693_v2 = vpop.permute.xlu1 %692 }
 0x22c   :  { %v1432_v47 = vpack.c.bf16 %v650_v42, %v649_v43  ;;  %v621_v48 = vadd.f32 %v620_v46, %v480_v41  ;;  %v705_v41 = vpop.permute.xlu0 %704 }
 0x22d   :  { %v652_v49 = vmax.f32 %v626_v45, 0.0 }
 0x22e   :  { %v651_v51 = vmax.f32 %v621_v48, 0.0  ;;  %v1240_v52 = vpop.f32.mrb[14].mxu1  ;;  %1433 = vmatprep.subr.bf16.mxu1 %v1432_v47 }
 0x22f   :  { %v636_v13 = vadd.f32 %v1240_v52, %v492_v50  ;;  %v630_v14 = vpop.f32.mrb[15].mxu1  ;;  %1435 = vmatpush3.bf16.msra.mxu1 %v1432_v47  ;;  %v701_v9 = vpop.permute.xlu1 %700 }
 0x230   :  { %v1436_v17 = vpack.c.bf16 %v652_v49, %v651_v51  ;;  %v631_v19 = vadd.f32 %v630_v14, %v488_v12  ;;  %v713_v12 = vpop.permute.xlu0 %712 }
 0x231   :  { %v654_v20 = vmax.f32 %v636_v13, 0.0 }
 0x232   :  { %v653_v21 = vmax.f32 %v631_v19, 0.0  ;;  %1437 = vmatprep.subr.bf16.mxu1 %v1436_v17 }
 0x233   :  { %1439 = vmatpush3.bf16.msra.mxu1 %v1436_v17  ;;  %v709_v37 = vpop.permute.xlu1 %708 }
 0x234   :  { %v1440_v24 = vpack.c.bf16 %v654_v20, %v653_v21 }
 0x236   :  { %1441 = vmatprep.subr.bf16.mxu1 %v1440_v24 }
 0x237   :  { %1443 = vmatpush3.bf16.msra.mxu1 %v1440_v24  ;;  %v717_v50 = vpop.permute.xlu1 %716 }
 0x23a   :  { %1274 = vmatmul.mubr.f32.vlgmr.msra.gmra.mrb[16].mxu1 %v656_v26 }
 0x23b   :  { %1276 = vmatprep.mubr.f32.mxu1 %v657_v27 }
 0x23e   :  { %1277 = vmatmul.mubr.f32.gmra.mrb[18].mxu1 %v658_v28  ;;  %v725_v28 = vpop.permute.xlu1 %724 }
 0x23f   :  { %1279 = vmatprep.mubr.f32.mxu1 %v659_v33 }
 0x242   :  { %1280 = vmatmul.mubr.f32.gmra.mrb[20].mxu1 %v660_v53 }
 0x243   :  { %1282 = vmatprep.mubr.f32.mxu1 %v661_v31  ;;  %v721_v31 = vpop.permute.xlu0 %720 }
 0x246   :  { %1283 = vmatmul.mubr.f32.gmra.mrb[22].mxu1 %v662_v54 }
 0x247   :  { %1285 = vmatprep.mubr.f32.mxu1 %v663_v35 }
 0x24a   :  { %1286 = vmatmul.mubr.f32.gmra.mrb[24].mxu1 %v664_v55 }
 0x24b   :  { %1288 = vmatprep.mubr.f32.mxu1 %v665_v34 }
 0x24e   :  { %1289 = vmatmul.mubr.f32.gmra.mrb[26].mxu1 %v666_v56 }
 0x24f   :  { %1291 = vmatprep.mubr.f32.mxu1 %v667_v38 }
 0x252   :  { %1292 = vmatmul.mubr.f32.gmra.mrb[28].mxu1 %v668_v57 }
 0x253   :  { %1294 = vmatprep.mubr.f32.mxu1 %v669_v58 }
 0x256   :  { %1295 = vmatmul.mubr.f32.gmra.mrb[30].mxu1 %v670_v59  ;;  %v733_v59 = vpop.permute.xlu1 %732 }
 0x30d   :  { %v1275_v4 = vpop.f32.mrb[16].mxu1 }
 0x30e   :  { %v807_v5 = vadd.f32 %v1275_v4, %v677_v1  ;;  %v801_v6 = vpop.f32.mrb[17].mxu1 }
 0x30f   :  { %v802_v7 = vadd.f32 %v801_v6, %v673_v62 }
 0x310   :  { %v881_v8 = vmax.f32 %v807_v5, 0.0 }
 0x311   :  { %v880_v10 = vmax.f32 %v802_v7, 0.0  ;;  %v1278_v11 = vpop.f32.mrb[18].mxu1  ;;  %v896_v7 = vld [vmem:[%s1956_s4] sm:$0xff] }
 0x312   :  { %v817_v16 = vadd.f32 %v1278_v11, %v685_v0  ;;  %v811_v18 = vpop.f32.mrb[19].mxu1 }
 0x313   :  { %v1445_v22 = vpack.c.bf16 %v881_v8, %v880_v10  ;;  %v812_v23 = vadd.f32 %v811_v18, %v681_v63  ;;  %v729_v63 = vpop.permute.xlu0 %728  ;;  %v898_v8 = vstv %s1958_s6 }
 0x314   :  { %v883_v25 = vmax.f32 %v817_v16, 0.0 }
 0x315   :  { %v882_v29 = vmax.f32 %v812_v23, 0.0  ;;  %v1281_v30 = vpop.f32.mrb[20].mxu1  ;;  %1446 = vmatpush3.bf16.msra.mxu0 %v1445_v22 }
 0x316   :  { %v827_v32 = vadd.f32 %v1281_v30, %v693_v2  ;;  %v821_v36 = vpop.f32.mrb[21].mxu1  ;;  %1447 = vmatprep.subr.bf16.mxu0 %v1508_v60 }
 0x317   :  { %v1448_v39 = vpack.c.bf16 %v883_v25, %v882_v29  ;;  %v822_v40 = vadd.f32 %v821_v36, %v689_v3 }
 0x318   :  { %v885_v42 = vmax.f32 %v827_v32, 0.0 }
 0x319   :  { %v884_v43 = vmax.f32 %v822_v40, 0.0  ;;  %v1284_v44 = vpop.f32.mrb[22].mxu1  ;;  %1449 = vmatpush3.bf16.msra.mxu0 %v1448_v39 }
 0x31a   :  { %v837_v45 = vadd.f32 %v1284_v44, %v701_v9  ;;  %v831_v46 = vpop.f32.mrb[23].mxu1  ;;  %1450 = vmatprep.subr.bf16.mxu0 %v1508_v60 }
 0x31b   :  { %v1451_v47 = vpack.c.bf16 %v885_v42, %v884_v43  ;;  %v832_v48 = vadd.f32 %v831_v46, %v697_v15 }
 0x31c   :  { %v887_v49 = vmax.f32 %v837_v45, 0.0 }
 0x31d   :  { %v886_v51 = vmax.f32 %v832_v48, 0.0  ;;  %v1287_v52 = vpop.f32.mrb[24].mxu1  ;;  %1452 = vmatpush3.bf16.msra.mxu0 %v1451_v47 }
 0x31e   :  { %v847_v13 = vadd.f32 %v1287_v52, %v709_v37  ;;  %v841_v14 = vpop.f32.mrb[25].mxu1  ;;  %1453 = vmatprep.subr.bf16.mxu0 %v1508_v60 }
 0x31f   :  { %v1454_v17 = vpack.c.bf16 %v887_v49, %v886_v51  ;;  %v842_v19 = vadd.f32 %v841_v14, %v705_v41 }
 0x320   :  { %v889_v20 = vmax.f32 %v847_v13, 0.0 }
 0x321   :  { %v888_v21 = vmax.f32 %v842_v19, 0.0  ;;  %v1290_v24 = vpop.f32.mrb[26].mxu1  ;;  %1455 = vmatpush3.bf16.msra.mxu0 %v1454_v17 }
 0x322   :  { %v857_v26 = vadd.f32 %v1290_v24, %v717_v50  ;;  %v851_v27 = vpop.f32.mrb[27].mxu1  ;;  %1456 = vmatprep.subr.bf16.mxu0 %v1508_v60 }
 0x323   :  { %v1457_v33 = vpack.c.bf16 %v889_v20, %v888_v21  ;;  %v852_v53 = vadd.f32 %v851_v27, %v713_v12 }
 0x324   :  { %v891_v54 = vmax.f32 %v857_v26, 0.0 }
 0x325   :  { %v890_v35 = vmax.f32 %v852_v53, 0.0  ;;  %v1293_v55 = vpop.f32.mrb[28].mxu1  ;;  %1458 = vmatpush3.bf16.msra.mxu0 %v1457_v33 }
 0x326   :  { %v867_v34 = vadd.f32 %v1293_v55, %v725_v28  ;;  %v861_v56 = vpop.f32.mrb[29].mxu1  ;;  %1459 = vmatprep.subr.bf16.mxu0 %v1508_v60 }
 0x327   :  { %v1460_v38 = vpack.c.bf16 %v891_v54, %v890_v35  ;;  %v862_v57 = vadd.f32 %v861_v56, %v721_v31 }
 0x328   :  { %v893_v58 = vmax.f32 %v867_v34, 0.0 }
 0x329   :  { %v892_v61 = vmax.f32 %v862_v57, 0.0  ;;  %v1296_v62 = vpop.f32.mrb[30].mxu1  ;;  %1461 = vmatpush3.bf16.msra.mxu0 %v1460_v38 }
 0x32a   :  { %v877_v0 = vadd.f32 %v1296_v62, %v733_v59  ;;  %v871_v1 = vpop.f32.mrb[31].mxu1  ;;  %1462 = vmatprep.subr.bf16.mxu0 %v1508_v60 }
 0x32b   :  { %v1463_v2 = vpack.c.bf16 %v893_v58, %v892_v61  ;;  %v872_v3 = vadd.f32 %v871_v1, %v729_v63 }
 0x32c   :  { %v895_v4 = vmax.f32 %v877_v0, 0.0 }
 0x32d   :  { %v894_v5 = vmax.f32 %v872_v3, 0.0  ;;  %1464 = vmatpush3.bf16.msra.mxu0 %v1463_v2 }
 0x32e   :  { %1465 = vmatprep.subr.bf16.mxu0 %v1508_v60 }
 0x32f   :  { %v1466_v6 = vpack.c.bf16 %v895_v4, %v894_v5 }
 0x331   :  { %1467 = vmatpush3.bf16.msra.mxu0 %v1466_v6 }
 0x334   :  { %1330 = vmatmul.mubr.f32.vlgmr.msra.gmra.mrb[16].mxu0 %v896_v7 }
 0x407   :  { %v965_v9 = vpop.f32.mrb[16].mxu0 }
 0x408   :  { %v966_v10 = vadd.f32 %v965_v9, %v898_v8  ;;  %v1331_v11 = vpop.f32.mrb[17].mxu0 }
 0x40a   :  { %969 = vst [vmem:[#allocation3] sm:$0xff] %v966_v10 }
 0x40b   :  { %1492 = shalt.err (!%p1489_p4)
}
 0x40c   :  { %s1493_s17 = scalar_lea.hbm %s1959_s7, 128 }
 0x40d   :  { %p1494_p5 = scmp.ne.s32.totalorder %s1959_s7, %s1493_s17  ;;  %p1497_p6 = scmp.lt.u32.totalorder %s1493_s17, %s1959_s7 }
 0x40f   :  { %p1499_p7 = pnand %p1497_p6, %p1494_p5 }
 0x411   :  { %1502 = shalt.err (!%p1499_p7)
}
 0x412   :  { %979 = dma.vmem_to_hbm [thread:$0]  %s977_s14, 128, %s1959_s7, [#allocation4]  }
 0x413   :  { %1503 = dma.done.wait [#allocation4], 128  }
 0x414   :  { %1504 = vsyncadd [#allocation4], 4294967168 }
 0x415   :  { %983 = vsyncpa [#allocation4], 1 }

</bundles_post_ra>
